<compile_context>
chip_gen: v5e
topology: v5e:2x2
jax: 0.10.0
libtpu: 0.0.40
codegen_flags: <defaults>
</compile_context>

<pallas_src>
import math

import jax
import jax.numpy as jnp
from jax.experimental import pallas as pl
from jax.experimental.pallas import tpu as pltpu


def _round_up(x, m):
    return ((x + m - 1) // m) * m


def cve_kernel(x_ref, wb_ref, w2_ref, o_ref):
    # x_ref:  (block_n, 1)       one scalar per row (f32)
    # wb_ref: (2, int_dim)       row 0: Linear(1, int_dim) weight, row 1: its bias (f32)
    # w2_ref: (int_dim, tile_h)  Linear(int_dim, hid_dim) weight tile (compute dtype)
    # o_ref:  (block_n, tile_h)
    x = x_ref[...]                                      # (block_n, 1)
    w1 = wb_ref[0:1, :]                                 # (1, int_dim)
    b1 = wb_ref[1:2, :]                                 # (1, int_dim)
    h = jnp.tanh(x * w1 + b1)                           # (block_n, int_dim), f32
    h = h.astype(w2_ref.dtype)                          # bf16 MXU path if w2 is bf16
    o_ref[...] = jnp.dot(h, w2_ref[...],
                         preferred_element_type=jnp.float32).astype(o_ref.dtype)


def cve_forward(x, w1, b1, w2, *, block_n=512, tile_h=2048,
                out_dtype=None, w2_compute_dtype=None, vmem_limit_bytes=None):
    """x: (...,) float. w1: (1, int_dim), b1: (int_dim,), w2: (int_dim, hid_dim).

    Returns (..., hid_dim).
    out_dtype:         dtype of the stored output (default: x.dtype).  bf16 halves
                       the dominant HBM write stream.
    w2_compute_dtype:  dtype w2 is streamed/fed to the MXU in (default: keep
                       w2.dtype; pass jnp.bfloat16 to halve w2 read traffic).
    """
    orig_shape = x.shape
    int_dim, hid_dim = w2.shape
    out_dtype = x.dtype if out_dtype is None else out_dtype

    # ---- hid_dim tiling: lane-dense tiles that divide hid_dim exactly (no pad) ----
    if hid_dim % 128 == 0:
        t = min(_round_up(max(tile_h, 128), 128), hid_dim)
        while hid_dim % t != 0:
            t -= 128
        tile_h = t
    else:
        # Small / irregular hid_dim: single full-width tile (block dim == full dim).
        tile_h = hid_dim
    num_h = hid_dim // tile_h

    # ---- rows: flatten, pick block_n (multiple of 8), pad rows if needed ----
    xf = x.reshape(-1, 1).astype(jnp.float32)            # (N, 1)
    n = xf.shape[0]
    block_n = max(8, _round_up(min(block_n, _round_up(n, 8)), 8))
    n_pad = _round_up(n, block_n)
    num_rows = n_pad // block_n
    # Guarantee >= 2 total grid steps when possible so both v7x TensorCores get work.
    if num_h == 1 and num_rows == 1 and n > 8:
        block_n = _round_up(-(-n // 2), 8)
        n_pad = _round_up(n, block_n)
        num_rows = n_pad // block_n
    if n_pad != n:
        xf = jnp.pad(xf, ((0, n_pad - n), (0, 0)))

    # ---- weights: w2 stays in its (or the requested) dtype; w1/b1 merged (tiny) ----
    w2_2d = w2 if w2_compute_dtype is None else w2.astype(w2_compute_dtype)
    wb = jnp.concatenate(
        [w1.reshape(1, int_dim).astype(jnp.float32),
         b1.reshape(1, int_dim).astype(jnp.float32)], axis=0)     # (2, int_dim)

    # Grid: hid tiles OUTER (w2 tile DMA'd once, resident across inner loop),
    #       row blocks INNER (only the tiny x block is re-fetched per step).
    grid = (num_h, num_rows)

    out = pl.pallas_call(
        cve_kernel,
        out_shape=jax.ShapeDtypeStruct((n_pad, hid_dim), out_dtype),
        grid=grid,
        in_specs=[
            pl.BlockSpec((block_n, 1), lambda j, i: (i, 0)),        # x: per row block
            pl.BlockSpec((2, int_dim), lambda j, i: (0, 0)),        # w1/b1: resident
            pl.BlockSpec((int_dim, tile_h), lambda j, i: (0, j)),   # w2: per hid tile
        ],
        out_specs=pl.BlockSpec((block_n, tile_h), lambda j, i: (i, j)),
        compiler_params=pltpu.CompilerParams(
            dimension_semantics=("parallel", "parallel"),
            vmem_limit_bytes=vmem_limit_bytes),
    )(xf, wb, w2_2d)

    if n_pad != n:
        out = out[:n]
    return out.reshape(*orig_shape, hid_dim)


def init_cve_params(key, hid_dim):
    """Deterministic init mirroring PyTorch nn.Linear default (uniform +-1/sqrt(fan_in))."""
    int_dim = int(math.sqrt(hid_dim))
    k1, k2, k3 = jax.random.split(key, 3)
    bound1 = 1.0 / math.sqrt(1.0)      # fan_in = 1
    bound2 = 1.0 / math.sqrt(int_dim)  # fan_in = int_dim
    w1 = jax.random.uniform(k1, (1, int_dim), jnp.float32, -bound1, bound1)
    b1 = jax.random.uniform(k2, (int_dim,), jnp.float32, -bound1, bound1)
    w2 = jax.random.uniform(k3, (int_dim, hid_dim), jnp.float32, -bound2, bound2)
    return w1, b1, w2


def cve_reference(x, w1, b1, w2):
    xe = x[..., None]                                  # (..., 1)
    h = jnp.tanh(xe * w1.reshape(1, -1) + b1)          # (..., int_dim)
    return h @ w2                                      # (..., hid_dim)


if __name__ == "__main__":
    batch, seq, hid_dim = 2, 8, 32

    key = jax.random.PRNGKey(0)
    kx, kp = jax.random.split(key)
    x = jax.random.normal(kx, (batch, seq), jnp.float32)
    w1, b1, w2 = init_cve_params(kp, hid_dim)

    ref = cve_reference(x, w1, b1, w2)

    # f32 validation path (matches PyTorch module numerics).
    out = cve_forward(x, w1, b1, w2)
    out = jax.block_until_ready(out)
    assert out.shape == (batch, seq, hid_dim), out.shape
    assert jnp.allclose(out, ref, atol=1e-5, rtol=1e-5), float(jnp.max(jnp.abs(out - ref)))

    # bf16-store / bf16-w2 fast path (the HBM-traffic-halving configuration).
    out_bf16 = cve_forward(x, w1, b1, w2,
                           out_dtype=jnp.bfloat16, w2_compute_dtype=jnp.bfloat16)
    out_bf16 = jax.block_until_ready(out_bf16)
    assert out_bf16.shape == (batch, seq, hid_dim), out_bf16.shape
    assert jnp.allclose(out_bf16.astype(jnp.float32), ref, atol=2e-2, rtol=2e-2), \
        float(jnp.max(jnp.abs(out_bf16.astype(jnp.float32) - ref)))

    print("KERNEL_OK")
</pallas_src>

<mosaic_0001>
module attributes {stable_mosaic.version = 11 : i64} {
  func.func @cve_kernel(%arg0: i32, %arg1: i32, %arg2: memref<8x1xf32, #tpu.memory_space<vmem>>, %arg3: memref<2x5xf32, #tpu.memory_space<vmem>>, %arg4: memref<5x32xf32, #tpu.memory_space<vmem>>, %arg5: memref<8x32xf32, #tpu.memory_space<vmem>>) attributes {dimension_semantics = [#tpu.dimension_semantics<parallel>, #tpu.dimension_semantics<parallel>], iteration_bounds = array<i64: 1, 2>, scalar_prefetch = 0 : i64, scratch_operands = 0 : i64, tpu.core_type = #tpu.core_type<tc>, window_params = [{transform_indices = @transform_0, window_bounds = array<i64: 8, 1>}, {pipeline_mode = #tpu.pipeline_mode<synchronous>, transform_indices = @transform_1, window_bounds = array<i64: 2, 5>}, {transform_indices = @transform_2, window_bounds = array<i64: 5, 32>}, {transform_indices = @transform_3, window_bounds = array<i64: 8, 32>}]} {
    %c0 = arith.constant 0 : index
    %c0_0 = arith.constant 0 : index
    %0 = vector.load %arg2[%c0, %c0_0] : memref<8x1xf32, #tpu.memory_space<vmem>>, vector<8x1xf32>
    %c0_1 = arith.constant 0 : index
    %c0_2 = arith.constant 0 : index
    %1 = vector.load %arg3[%c0_1, %c0_2] : memref<2x5xf32, #tpu.memory_space<vmem>>, vector<1x5xf32>
    %c1 = arith.constant 1 : index
    %c0_3 = arith.constant 0 : index
    %2 = vector.load %arg3[%c1, %c0_3] : memref<2x5xf32, #tpu.memory_space<vmem>>, vector<1x5xf32>
    %3 = vector.broadcast %0 : vector<8x1xf32> to vector<8x5xf32>
    %4 = vector.broadcast %1 : vector<1x5xf32> to vector<8x5xf32>
    %5 = arith.mulf %3, %4 : vector<8x5xf32>
    %6 = vector.broadcast %2 : vector<1x5xf32> to vector<8x5xf32>
    %7 = arith.addf %5, %6 : vector<8x5xf32>
    %8 = math.tanh %7 : vector<8x5xf32>
    %c0_4 = arith.constant 0 : index
    %c0_5 = arith.constant 0 : index
    %9 = vector.load %arg4[%c0_4, %c0_5] : memref<5x32xf32, #tpu.memory_space<vmem>>, vector<5x32xf32>
    %cst = arith.constant dense<0.000000e+00> : vector<8x32xf32>
    %10 = tpu.matmul %8, %9, %cst {dimension_numbers = #tpu.dot_dimension_numbers<[1], [0], [0], [1], [0, 0, 1, 1], [], []>} : vector<8x5xf32>, vector<5x32xf32>, vector<8x32xf32> -> vector<8x32xf32>
    %c0_6 = arith.constant 0 : index
    %c0_7 = arith.constant 0 : index
    %11 = vector.load %arg5[%c0_6, %c0_7] : memref<8x32xf32, #tpu.memory_space<vmem>>, vector<8x32xf32>
    tpu.vector_store %arg5[%c0_6, %c0_7], %10 {strides = array<i32>} : memref<8x32xf32, #tpu.memory_space<vmem>>, vector<8x32xf32>,
    return
  }
  func.func @transform_0(%arg0: i32, %arg1: i32) -> (i32, i32) {
    %c0_i32 = arith.constant 0 : i32
    %c0_i32_0 = arith.constant 0 : i32
    return %arg1, %c0_i32 : i32, i32
  }
  func.func @transform_1(%arg0: i32, %arg1: i32) -> (i32, i32) {
    %c0_i32 = arith.constant 0 : i32
    %c0_i32_0 = arith.constant 0 : i32
    %c0_i32_1 = arith.constant 0 : i32
    return %c0_i32, %c0_i32_0 : i32, i32
  }
  func.func @transform_2(%arg0: i32, %arg1: i32) -> (i32, i32) {
    %c0_i32 = arith.constant 0 : i32
    %c0_i32_0 = arith.constant 0 : i32
    return %c0_i32, %arg0 : i32, i32
  }
  func.func @transform_3(%arg0: i32, %arg1: i32) -> (i32, i32) {
    %c0_i32 = arith.constant 0 : i32
    return %arg1, %arg0 : i32, i32
  }
}

</mosaic_0001>

<bundles_post_ra>
// kernel: tpu_custom_call.1
= control target key start
LH: loop header
LB: loop body
LE: loop exit
PB: predicated region body
PF: predicated region fallthrough
CT: control target
= control target key end

     0   :  { %8 = vsyncpa [#allocation3], 0  ;;  %s623_s0 = inlined_call_operand.vmem [shape: f32[16,1], index: 0, kind: input, shape index: {}]   ;;  %s624_s1 = inlined_call_operand.vmem [shape: f32[2,5], index: 1, kind: input, shape index: {}]   ;;  %s625_s2 = inlined_call_operand.vmem [shape: f32[5,32], index: 2, kind: input, shape index: {}]   ;;  %s626_s3 = inlined_call_operand.hbm [shape: f32[16,32], index: 3, kind: output, shape index: {}]  }
   0x1   :  { %10 = vsyncpa [#allocation3 + $0x1], 0  ;;  %s517_s12 = smov 0   ;;  %s519_s13 = smov 0  }
   0x2   :  { %s521_s14 = smov 0   ;;  %s523_s15 = smov 0  }
   0x3   :  { %s525_s16 = smov 0   ;;  %s527_s17 = smov 0  }
   0x4 LB: > { %s341_s18 = sadd.s32 4294967295, %s494_s17   ;;  %s342_s19 = sadd.s32 4294967294, %s494_s17   ;;  %s494_s17 = sphi %s527_s17, %s16_s17   ;;  %s490_s16 = sphi %s525_s16, %s633_s16   ;;  %s486_s15 = sphi %s523_s15, %s632_s15   ;;  %s482_s14 = sphi %s521_s14, %s631_s14   ;;  %s478_s13 = sphi %s519_s13, %s630_s13   ;;  %s474_s12 = sphi %s517_s12, %s629_s12  }
   0x5   : > { %s25_s20 = sadd.s32 1, %s490_s16  ;;  %s110_s21 = sadd.s32 1, %s482_s14 }
   0x6   : > { %p26_p0 = scmp.ge.s32.totalorder %s25_s20, 2  ;;  %p120_p1 = scmp.ne.s32.totalorder %s482_s14, %s478_s13 }
   0x7   : > { %p121_p2 = scmp.eq.s32.totalorder %s341_s18, 1  ;;  %p126_p3 = scmp.ne.s32.totalorder %s478_s13, %s474_s12 }
   0x8   : > { %s635_s20 = smov (%p26_p0, %s25_s20), 0  ;;  %p127_p5 = scmp.eq.s32.totalorder %s342_s19, 1 }
   0x9   : > { %p557_p4 = por %p121_p2, %p120_p1  ;;  %s105_s23 = ssub.s32 %s490_s16, %s635_s20 }
   0xa   : > { %p346_p6 = scmp.ge.s32.totalorder %s494_s17, 1  ;;  %p108_p7 = scmp.eq.s32.totalorder %s105_s23, 0 }
   0xb   : > { %p564_p8 = por %p127_p5, %p126_p3  ;;  %p162_p9 = scmp.lt.s32.totalorder %s494_s17, 3 }
   0xc   : > { %s570_s25 = scalar_select %p108_p7, %s482_s14, %s110_s21  }
   0xd   : > { %p163_p10 = pnand %p346_p6, %p162_p9 }
   0xe   : > { %p189_p11 = scmp.lt.s32.totalorder (!%p163_p10), %s486_s15, 1  ;;  %s186_s10 = sand.u32 (!%p163_p10), 1, %s478_s13  }
   0xf   : > { %166 = sbr.rel (%p163_p10) target bundleno = 280 (0x118), region = 32  ;;  %s347_s11 = sshll.u32 (!%p163_p10), %s186_s10, 3 }
  0x10   : > { %s352_s18 = sshll.u32 (!%p163_p10), %s486_s15, 3  ;;  %s242_s29 = scalar_lea.sflag (!%p163_p10), [#allocation3], %s186_s10 }
  0x11   : > { %s253_s23 = scalar_lea.hbm (!%p163_p10), %s626_s3, %s352_s18  ;;  %s436_s6 = scalar_lea.hbm (!%p163_p10), %s626_s3, 16 }
  0x12   : > { %s257_s28 = sshll.u32 (!%p163_p10), %s253_s23, 4  ;;  %s258_s28 = int_to_ptr.hbm [resolvable:$true] %s257_s28 }
  0x14   : > { %v496_v0 = vmov 0   ;;  %s190_s26 = scalar_select %p189_p11, %s486_s15, 1  ;;  %v210_v2 = vld [vmem:[%s625_s2] sm:$0x1f]  ;;  %vm215_vm0 = vcmask 1044480   ;;  %vm211_vm1 = vcmask 39936  }
  0x15   : > { %411 = vset.pattern.permute.xlu0 %v496_v0  ;;  %349 = vmatpush.msk.msra.mxu0 %vm215_vm0, %v210_v2  ;;  %v412_v3 = vld [vmem:[%s624_s1] ss:$0 sm:$0xff]  ;;  %v413_v4 = vld [vmem:[%s624_s1 + $0x1] ss:$0 sm:$0xff]  ;;  %vm239_vm2 = vcmask 261120  }
  0x16   : > { %s348_s27 = sshll.u32 %s190_s26, 3  ;;  %s188_s26 = scalar_lea.vmem [#allocation2], %s347_s11 }
  0x17   : > { %s192_s30 = scalar_lea.vmem %s623_s0, %s348_s27  ;;  %s255_s27 = sshll.u32 %s188_s26, 4  ;;  %s256_s27 = int_to_ptr.vmem [resolvable:$true] %s255_s27 }
  0x18   : > { %v197_v1 = vld [vmem:[%s192_s30] sm:$0xff]  ;;  %s430_s30 = sshra.s32 %s258_s28, 4  ;;  %s431_s30 = int_to_ptr.hbm [resolvable:$true] %s430_s30 }
  0x19   : > { %202 = vperm.xlu0 %411, %v197_v1   ;;  %s432_s4 = scalar_lea.hbm %s431_s30, 8  ;;  %p437_p1 = scmp.lt.s32.totalorder %s431_s30, %s626_s3 }
  0x1a   : > { %p433_p12 = scmp.ne.s32.totalorder %s431_s30, %s432_s4  ;;  %p438_p2 = scmp.lt.s32.totalorder %s436_s6, %s432_s4 }
  0x1c   : > { %p434_p13 = pnand %p433_p12, %p557_p4  ;;  %p439_p3 = por %p438_p2, %p437_p1 }
  0x1e   : > { %p435_p0 = pneg %p434_p13 }
  0x20   : > { %p440_p5 = pnand %p439_p3, %p435_p0 }
  0x8b   : > { %v203_v5 = vpop.permute.xlu0 %202 }
  0x8c   : > { %v206_v6 = vmul.f32 %v412_v3, %v203_v5 }
  0x8e   : > { %v208_v7 = vadd.f32 %v413_v4, %v206_v6 }
  0x90   : > { %414 = vtanh.f32 %v208_v7 }
  0x96   : > { %v415_v8 = vpop.eup %414 }
  0x97   : > { %350 = vmatmul.msk.f32.vlgmr.msra.gmra.mxu0 %vm211_vm1, %v415_v8 }
 0x114   : > { %v236_v9 = vpop.f32.mrf.mxu0 }
 0x115   : > { %240 = vst.msk [vmem:[%s188_s26] sm:$0xff] %vm239_vm2, %v236_v9 }
 0x116   : > { %443 = shalt.err (!%p440_p5)
}
 0x117   : > { %355 = dma.vmem_to_hbm [thread:$0]  (%p557_p4), %s256_s27, 128, %s258_s28, %s242_s29  }
 0x118 PF: > { %p361_p6 = scmp.ge.s32.totalorder %s494_s17, 2  ;;  %s269_s9 = sand.u32 1, %s474_s12  }
 0x119   : > { %s270_s10 = scalar_lea.sflag [#allocation3], %s269_s9 }
 0x11a   : > { %p358_p7 = pnand %p361_p6, %p564_p8 }
 0x11c   : > { %p359_p9 = pneg %p358_p7 }
 0x11e   : > { %469 = dma.done.wait (%p359_p9), %s270_s10, 128  }
 0x11f   : > { %471 = vsyncadd (%p359_p9), %s270_s10, 4294967168  ;;  %s16_s17 = sadd.s32 1, %s494_s17   ;;  %s629_s12 = smov %s478_s13 }
 0x120   : > { %p13_p10 = scmp.ge.s32.totalorder %s16_s17, 4   ;;  %s630_s13 = smov %s482_s14 }
 0x121   : > { %s631_s14 = smov %s570_s25  ;;  %s632_s15 = smov %s490_s16 }
 0x122   : > { %s633_s16 = smov %s635_s20  ;;  %15 = sbr.rel (!%p13_p10) target bundleno = 4 (0x4), region = 70 }
 0x127   :  { %276 = vsyncpa [#allocation3], 1 }
 0x128   :  { %278 = vsyncpa [#allocation3 + $0x1], 1 }

</bundles_post_ra>
